<compile_context>
chip_gen: v5e
topology: v5e:2x2
jax: 0.10.0
libtpu: 0.0.40
codegen_flags: <defaults>
</compile_context>

<pallas_src>
from typing import NamedTuple

import jax
import jax.numpy as jnp
from jax.experimental import pallas as pl
from jax.experimental.pallas import tpu as pltpu


# ----------------------------------------------------------------------------
# Hardware queries / tile selection
# ----------------------------------------------------------------------------
def _physical_vmem_bytes() -> int:
    """Per-core VMEM capacity; conservative 64 MiB fallback (v7x-sized)."""
    try:
        info = pltpu.get_tpu_info()
        v = getattr(info, "vmem_capacity_bytes", None)
        if v:
            return int(v)
    except Exception:
        pass
    return 64 << 20


def _vmem_cap_bytes() -> int:
    phys = _physical_vmem_bytes()
    # Leave headroom below physical capacity (Mosaic internal scratch etc.).
    return max(min(phys - (12 << 20), 116 << 20), 32 << 20)


def _round_up(x: int, m: int) -> int:
    return ((x + m - 1) // m) * m


def choose_hidden_tile(hidden: int, dim: int) -> int:
    """Hidden-dim tile th. Larger th => deeper MXU K for the w2 matmul and
    fewer full (tm, dim) accumulator read-modify-write passes."""
    cap = _vmem_cap_bytes()
    candidates = [512, 256, 128] if (cap >= (100 << 20) and dim <= 8192) else [256, 128]
    for c in candidates:
        if c <= hidden and hidden % c == 0:
            return c
    # Non-128-aligned hidden: single full-hidden block (masked/relayout path).
    return hidden


def _vmem_estimate(tm, th, dim, out_itemsize, use_acc, nbuf_w, csz=2):
    x_tiles = 2 * tm * dim * csz                 # double-buffered activations
    w13     = nbuf_w * dim * (2 * th) * csz      # streamed [W1^T | W3^T] tile
    w2      = nbuf_w * th * dim * csz            # streamed W2^T tile
    out     = 2 * tm * dim * out_itemsize        # resident output + writeback
    acc     = tm * dim * 4 if use_acc else 0     # f32 accumulator scratch
    inter   = 2 * tm * (2 * th) * 4              # h13 / gated intermediates
    return x_tiles + w13 + w2 + out + acc + inter


# ----------------------------------------------------------------------------
# Kernels
# ----------------------------------------------------------------------------
def _ffn_kernel_acc(x_ref, w13_ref, w2_ref, o_ref, acc_ref):
    """General path: f32 accumulator scratch, output cast at the last hidden step."""
    h = pl.program_id(1)
    th = w2_ref.shape[0]  # static hidden tile size

    x = x_ref[...]
    # One fused MXU matmul covering both the w1 and w3 gates for this tile.
    h13 = jnp.dot(x, w13_ref[...], preferred_element_type=jnp.float32)  # (tm, 2*th)
    h1 = h13[:, :th]
    h3 = h13[:, th:]
    # SiLU(h1) * h3 in f32 (sigmoid -> EUP, mul -> VPU).
    g = (h1 * jax.nn.sigmoid(h1)) * h3
    partial = jnp.dot(g.astype(w2_ref.dtype), w2_ref[...],
                      preferred_element_type=jnp.float32)

    @pl.when(h == 0)
    def _init():
        acc_ref[...] = partial

    @pl.when(h > 0)
    def _accum():
        acc_ref[...] += partial

    @pl.when(h == pl.num_programs(1) - 1)
    def _finalize():
        o_ref[...] = acc_ref[...].astype(o_ref.dtype)


def _ffn_kernel_f32_out(x_ref, w13_ref, w2_ref, o_ref):
    """f32-output path: accumulate directly into the resident output block
    (saves a (tm, dim) f32 scratch and the finalize copy)."""
    h = pl.program_id(1)
    th = w2_ref.shape[0]

    x = x_ref[...]
    h13 = jnp.dot(x, w13_ref[...], preferred_element_type=jnp.float32)
    h1 = h13[:, :th]
    h3 = h13[:, th:]
    g = (h1 * jax.nn.sigmoid(h1)) * h3
    partial = jnp.dot(g.astype(w2_ref.dtype), w2_ref[...],
                      preferred_element_type=jnp.float32)

    @pl.when(h == 0)
    def _init():
        o_ref[...] = partial

    @pl.when(h > 0)
    def _accum():
        o_ref[...] += partial


# ----------------------------------------------------------------------------
# Weight packing (run ONCE at parameter-load time in a real model)
# ----------------------------------------------------------------------------
class PackedFFNWeights(NamedTuple):
    w13t: jax.Array   # (dim, 2*hidden): per th-tile the columns are [W1^T | W3^T]
    w2t: jax.Array    # (hidden, dim) == W2^T
    th: int
    hidden: int
    dim: int


def pack_ffn_weights(w1, w2, w3, *, th=None, compute_dtype=jnp.bfloat16):
    """PyTorch nn.Linear layout in: w1, w3: (hidden, dim); w2: (dim, hidden).

    This is the load-time step: transpose + cast + interleave per hidden tile.
    Do NOT call it per forward pass in a real model.
    """
    hidden, dim = w1.shape
    if th is None:
        th = choose_hidden_tile(hidden, dim)
    assert hidden % th == 0, "hidden must be a multiple of the hidden tile th"
    nh = hidden // th
    w1t = w1.T.astype(compute_dtype)            # (dim, hidden)
    w3t = w3.T.astype(compute_dtype)            # (dim, hidden)
    w13t = jnp.concatenate(
        [w1t.reshape(dim, nh, th), w3t.reshape(dim, nh, th)], axis=2
    ).reshape(dim, 2 * hidden)                  # (dim, 2*hidden)
    w2t = w2.T.astype(compute_dtype)            # (hidden, dim)
    return PackedFFNWeights(w13t=w13t, w2t=w2t, th=int(th),
                            hidden=int(hidden), dim=int(dim))


# ----------------------------------------------------------------------------
# Wrappers
# ----------------------------------------------------------------------------
def feed_forward_packed(x, packed: PackedFFNWeights, *, tm=None):
    """x: (..., dim); packed: pre-packed weights from pack_ffn_weights()."""
    orig_shape = x.shape
    out_dtype = x.dtype
    dim = orig_shape[-1]
    assert dim == packed.dim, "x feature dim must match packed weights"
    hidden, th = packed.hidden, packed.th
    compute_dtype = packed.w13t.dtype

    x2d = x.reshape(-1, dim).astype(compute_dtype)
    M = x2d.shape[0]

    use_acc = out_dtype != jnp.float32   # f32 out -> accumulate directly in o_ref
    out_itemsize = jnp.dtype(out_dtype).itemsize
    cap = _vmem_cap_bytes()

    if tm is None:
        # Large tm for prefill/training (arithmetic intensity ~ tm FLOP/byte of
        # streamed weight); clamp to the real token count for decode-sized M.
        tm_target = 1024 if cap >= (100 << 20) else 512
        tm = min(tm_target, _round_up(M, 8))
        while _vmem_estimate(tm, th, dim, out_itemsize, use_acc, 2) > cap and tm > 8:
            tm = max(8, (tm // 2 // 8) * 8)
    tm = int(tm)

    M_pad = _round_up(M, tm)
    if M_pad != M:
        x2d = jnp.pad(x2d, ((0, M_pad - M), (0, 0)))

    n_row_tiles = M_pad // tm
    n_hidden = hidden // th
    grid = (n_row_tiles, n_hidden)

    # Decode / weight-streaming regime: deepen pipelining on the weight
    # operands if VMEM headroom allows (hides per-step DMA issue overhead).
    nbuf_w = 2
    if (n_row_tiles == 1 and n_hidden >= 3
            and _vmem_estimate(tm, th, dim, out_itemsize, use_acc, 3) <= cap):
        nbuf_w = 3

    est = _vmem_estimate(tm, th, dim, out_itemsize, use_acc, nbuf_w)
    vmem_limit = int(min(cap, max(int(1.3 * est) + (8 << 20), 32 << 20)))

    w_kw = {} if nbuf_w == 2 else {"pipeline_mode": pl.Buffered(nbuf_w)}
    in_specs = [
        pl.BlockSpec((tm, dim), lambda i, h: (i, 0)),           # x rows
        pl.BlockSpec((dim, 2 * th), lambda i, h: (0, h), **w_kw),  # [W1t|W3t] tile
        pl.BlockSpec((th, dim), lambda i, h: (h, 0), **w_kw),      # W2t tile
    ]

    if use_acc:
        kernel = _ffn_kernel_acc
        scratch = [pltpu.VMEM((tm, dim), jnp.float32)]
    else:
        kernel = _ffn_kernel_f32_out
        scratch = []

    out2d = pl.pallas_call(
        kernel,
        out_shape=jax.ShapeDtypeStruct((M_pad, dim), out_dtype),
        grid_spec=pltpu.PrefetchScalarGridSpec(
            num_scalar_prefetch=0,
            grid=grid,
            in_specs=in_specs,
            out_specs=pl.BlockSpec((tm, dim), lambda i, h: (i, 0)),
            scratch_shapes=scratch,
        ),
        compiler_params=pltpu.CompilerParams(
            dimension_semantics=("parallel", "arbitrary"),
            vmem_limit_bytes=vmem_limit,
        ),
    )(x2d, packed.w13t, packed.w2t)

    if M_pad != M:
        out2d = out2d[:M]
    return out2d.reshape(orig_shape)


def feed_forward(x, w1, w2, w3, *, tm=None, th=None, compute_dtype=jnp.bfloat16):
    """Convenience wrapper: packs weights then calls the packed kernel.
    In a real model, hoist pack_ffn_weights() to parameter-load time and call
    feed_forward_packed() directly."""
    packed = pack_ffn_weights(w1, w2, w3, th=th, compute_dtype=compute_dtype)
    return feed_forward_packed(x, packed, tm=tm)


# ----------------------------------------------------------------------------
# Pure-JAX reference matching PyTorch semantics (f32)
# ----------------------------------------------------------------------------
def _reference(x, w1, w2, w3):
    h1 = jnp.einsum("...d,hd->...h", x, w1)
    h3 = jnp.einsum("...d,hd->...h", x, w3)
    g = jax.nn.silu(h1) * h3
    return jnp.einsum("...h,dh->...d", g, w2)


if __name__ == "__main__":
    # Module hyperparams (small but tile-friendly):
    dim = 128
    hidden_dim_arg = 384
    multiple_of = 128
    # Replicate FeedForward.__init__ hidden_dim computation:
    hidden_dim = int(2 * hidden_dim_arg / 3)                                     # 256
    hidden_dim = multiple_of * ((hidden_dim + multiple_of - 1) // multiple_of)   # 256

    batch, seq = 2, 8

    key = jax.random.PRNGKey(0)
    kx, k1, k2, k3 = jax.random.split(key, 4)
    x = jax.random.normal(kx, (batch, seq, dim), dtype=jnp.float32)
    # nn.Linear weight shapes: (out_features, in_features), bias=False.
    scale1 = 1.0 / (dim ** 0.5)
    scale2 = 1.0 / (hidden_dim ** 0.5)
    w1 = jax.random.uniform(k1, (hidden_dim, dim), jnp.float32, -scale1, scale1)
    w2 = jax.random.uniform(k2, (dim, hidden_dim), jnp.float32, -scale2, scale2)
    w3 = jax.random.uniform(k3, (hidden_dim, dim), jnp.float32, -scale1, scale1)

    ref = _reference(x, w1, w2, w3)

    # --- Test 1: pre-packed (load-time) weights, auto tiles (tm clamps to the
    # real token count; f32 output accumulates directly into o_ref). ---------
    packed = pack_ffn_weights(w1, w2, w3)          # hoisted, run once
    out1 = jax.block_until_ready(feed_forward_packed(x, packed))
    assert out1.shape == x.shape
    assert jnp.allclose(out1, ref, atol=2e-2, rtol=2e-2), "mismatch (auto tiles)"

    # --- Test 2: forced tm=256 / th=128 to exercise the padded-row path
    # (M=16 -> 256) and the multi-hidden-step accumulation path. -------------
    packed_small = pack_ffn_weights(w1, w2, w3, th=128)
    out2 = jax.block_until_ready(feed_forward_packed(x, packed_small, tm=256))
    assert out2.shape == x.shape
    assert jnp.allclose(out2, ref, atol=2e-2, rtol=2e-2), "mismatch (padded/tiled)"

    # --- Test 3: bf16 activations -> exercises the f32-scratch-accumulator
    # kernel with a bf16 output. ---------------------------------------------
    out3 = jax.block_until_ready(feed_forward(x.astype(jnp.bfloat16), w1, w2, w3))
    assert out3.dtype == jnp.bfloat16 and out3.shape == x.shape
    assert jnp.allclose(out3.astype(jnp.float32), ref, atol=5e-2, rtol=5e-2), \
        "mismatch (bf16 path)"

    print("KERNEL_OK")
</pallas_src>

<mosaic_0001>
module attributes {stable_mosaic.version = 11 : i64} {
  func.func @_ffn_kernel_f32_out(%arg0: i32, %arg1: i32, %arg2: memref<16x128xbf16, #tpu.memory_space<vmem>>, %arg3: memref<128x512xbf16, #tpu.memory_space<vmem>>, %arg4: memref<256x128xbf16, #tpu.memory_space<vmem>>, %arg5: memref<16x128xf32, #tpu.memory_space<vmem>>) attributes {dimension_semantics = [#tpu.dimension_semantics<parallel>, #tpu.dimension_semantics<arbitrary>], iteration_bounds = array<i64: 1, 1>, scalar_prefetch = 0 : i64, scratch_operands = 0 : i64, tpu.core_type = #tpu.core_type<tc>, window_params = [{transform_indices = @transform_0, window_bounds = array<i64: 16, 128>}, {transform_indices = @transform_1, window_bounds = array<i64: 128, 512>}, {transform_indices = @transform_2, window_bounds = array<i64: 256, 128>}, {transform_indices = @transform_3, window_bounds = array<i64: 16, 128>}]} {
    %c0 = arith.constant 0 : index
    %c0_0 = arith.constant 0 : index
    %0 = vector.load %arg2[%c0, %c0_0] : memref<16x128xbf16, #tpu.memory_space<vmem>>, vector<16x128xbf16>
    %c0_1 = arith.constant 0 : index
    %c0_2 = arith.constant 0 : index
    %1 = vector.load %arg3[%c0_1, %c0_2] : memref<128x512xbf16, #tpu.memory_space<vmem>>, vector<128x512xbf16>
    %cst = arith.constant dense<0.000000e+00> : vector<16x512xf32>
    %2 = tpu.matmul %0, %1, %cst {dimension_numbers = #tpu.dot_dimension_numbers<[1], [0], [0], [1], [0, 0, 1, 1], [], []>} : vector<16x128xbf16>, vector<128x512xbf16>, vector<16x512xf32> -> vector<16x512xf32>
    %3 = vector.extract_strided_slice %2 {offsets = [0, 0], sizes = [16, 256], strides = [1, 1]} : vector<16x512xf32> to vector<16x256xf32>
    %4 = vector.extract_strided_slice %2 {offsets = [0, 256], sizes = [16, 256], strides = [1, 1]} : vector<16x512xf32> to vector<16x256xf32>
    %5 = arith.negf %3 : vector<16x256xf32>
    %6 = math.exp %5 : vector<16x256xf32>
    %cst_3 = arith.constant 1.000000e+00 : f32
    %7 = vector.broadcast %cst_3 : f32 to vector<16x256xf32>
    %8 = arith.addf %7, %6 : vector<16x256xf32>
    %9 = arith.divf %7, %8 : vector<16x256xf32>
    %10 = arith.mulf %3, %9 : vector<16x256xf32>
    %11 = arith.mulf %10, %4 : vector<16x256xf32>
    %12 = arith.truncf %11 : vector<16x256xf32> to vector<16x256xbf16>
    %c0_4 = arith.constant 0 : index
    %c0_5 = arith.constant 0 : index
    %13 = vector.load %arg4[%c0_4, %c0_5] : memref<256x128xbf16, #tpu.memory_space<vmem>>, vector<256x128xbf16>
    %cst_6 = arith.constant dense<0.000000e+00> : vector<16x128xf32>
    %14 = tpu.matmul %12, %13, %cst_6 {dimension_numbers = #tpu.dot_dimension_numbers<[1], [0], [0], [1], [0, 0, 1, 1], [], []>} : vector<16x256xbf16>, vector<256x128xbf16>, vector<16x128xf32> -> vector<16x128xf32>
    %c0_i32 = arith.constant 0 : i32
    %15 = arith.cmpi eq, %arg1, %c0_i32 : i32
    %16 = arith.extui %15 : i1 to i32
    %c0_i32_7 = arith.constant 0 : i32
    %17 = arith.cmpi ne, %16, %c0_i32_7 : i32
    scf.if %17 {
      %c0_10 = arith.constant 0 : index
      %c0_11 = arith.constant 0 : index
      %21 = vector.load %arg5[%c0_10, %c0_11] : memref<16x128xf32, #tpu.memory_space<vmem>>, vector<16x128xf32>
      tpu.vector_store %arg5[%c0_10, %c0_11], %14 {strides = array<i32>} : memref<16x128xf32, #tpu.memory_space<vmem>>, vector<16x128xf32>,
    } else {
    }
    %c0_i32_8 = arith.constant 0 : i32
    %18 = arith.cmpi sgt, %arg1, %c0_i32_8 : i32
    %19 = arith.extui %18 : i1 to i32
    %c0_i32_9 = arith.constant 0 : i32
    %20 = arith.cmpi ne, %19, %c0_i32_9 : i32
    scf.if %20 {
      %c0_10 = arith.constant 0 : index
      %c0_11 = arith.constant 0 : index
      %21 = vector.load %arg5[%c0_10, %c0_11] : memref<16x128xf32, #tpu.memory_space<vmem>>, vector<16x128xf32>
      %22 = arith.addf %21, %14 : vector<16x128xf32>
      %c0_12 = arith.constant 0 : index
      %c0_13 = arith.constant 0 : index
      %23 = vector.load %arg5[%c0_12, %c0_13] : memref<16x128xf32, #tpu.memory_space<vmem>>, vector<16x128xf32>
      tpu.vector_store %arg5[%c0_12, %c0_13], %22 {strides = array<i32>} : memref<16x128xf32, #tpu.memory_space<vmem>>, vector<16x128xf32>,
    } else {
    }
    return
  }
  func.func @transform_0(%arg0: i32, %arg1: i32) -> (i32, i32) {
    %c0_i32 = arith.constant 0 : i32
    %c0_i32_0 = arith.constant 0 : i32
    return %arg0, %c0_i32 : i32, i32
  }
  func.func @transform_1(%arg0: i32, %arg1: i32) -> (i32, i32) {
    %c0_i32 = arith.constant 0 : i32
    %c0_i32_0 = arith.constant 0 : i32
    return %c0_i32, %arg1 : i32, i32
  }
  func.func @transform_2(%arg0: i32, %arg1: i32) -> (i32, i32) {
    %c0_i32 = arith.constant 0 : i32
    %c0_i32_0 = arith.constant 0 : i32
    return %arg1, %c0_i32 : i32, i32
  }
  func.func @transform_3(%arg0: i32, %arg1: i32) -> (i32, i32) {
    %c0_i32 = arith.constant 0 : i32
    %c0_i32_0 = arith.constant 0 : i32
    return %arg0, %c0_i32 : i32, i32
  }
}

</mosaic_0001>

<bundles_post_ra>
// kernel: tpu_custom_call.1
= control target key start
LH: loop header
LB: loop body
LE: loop exit
PB: predicated region body
PF: predicated region fallthrough
CT: control target
= control target key end

     0   :  { %8 = vsyncpa [#allocation3], 0  ;;  %s1043_s0 = inlined_call_operand.hbm [shape: bf16[16,128], index: 0, kind: input, shape index: {}]   ;;  %s1044_s1 = inlined_call_operand.hbm [shape: bf16[128,512], index: 1, kind: input, shape index: {}]   ;;  %s1045_s2 = inlined_call_operand.hbm [shape: bf16[256,128], index: 2, kind: input, shape index: {}]   ;;  %s1046_s3 = inlined_call_operand.hbm [shape: f32[16,128], index: 3, kind: output, shape index: {}]  }
   0x1   :  { %9 = vsyncpa [#allocation6], 0  ;;  %s28_s14 = sshll.u32 %s1044_s1, 4  ;;  %s29_s14 = int_to_ptr.hbm [resolvable:$true] %s28_s14 }
   0x2   :  { %10 = vsyncpa [#allocation4], 0  ;;  %s973_s15 = smov [#allocation5]   ;;  %s15_s19 = sshll.u32 %s1043_s0, 4  ;;  %s16_s19 = int_to_ptr.hbm [resolvable:$true] %s15_s19 }
   0x3   :  { %s30_s16 = sshll.u32 %s973_s15, 4  ;;  %s974_s20 = smov 256   ;;  %s31_s16 = int_to_ptr.vmem [resolvable:$true] %s30_s16 }
   0x4   :  { %s975_s21 = smov 16   ;;  %s976_s22 = smov [#allocation2]  }
   0x5   :  { %36 = dma.hbm_to_vmem [thread:$0]  %s29_s14, 4096, %s31_s16, [#allocation6], %s974_s20, %s974_s20, %s975_s21  }
   0x6   :  { %s17_s23 = sshll.u32 %s976_s22, 4  ;;  %s977_s24 = smov 64   ;;  %s18_s23 = int_to_ptr.vmem [resolvable:$true] %s17_s23 }
   0x7   :  { %s978_s25 = smov 4   ;;  %s41_s27 = sshll.u32 %s1045_s2, 4  ;;  %s42_s27 = int_to_ptr.hbm [resolvable:$true] %s41_s27 }
   0x8   :  { %23 = dma.hbm_to_vmem [thread:$0]  %s16_s19, 128, %s18_s23, [#allocation3], %s977_s24, %s977_s24, %s978_s25  }
   0x9   :  { %s979_s28 = smov [#allocation7]  }
   0xa   :  { %s43_s29 = sshll.u32 %s979_s28, 4  ;;  %s44_s29 = int_to_ptr.vmem [resolvable:$true] %s43_s29 }
   0xb   :  { %49 = dma.hbm_to_vmem [thread:$0]  %s42_s27, 2048, %s44_s29, [#allocation6], %s977_s24, %s977_s24, %s978_s25  }
   0xc   :  { %967 = dma.done.wait [#allocation3], 128  }
   0xd   :  { %968 = vsyncadd [#allocation3], 4294967168 }
   0xe   :  { %969 = dma.done.wait [#allocation6], 6144  }
   0xf   :  { %970 = vsyncadd [#allocation6], 4294961152  ;;  %v714_v0 = vld [vmem:[#allocation5 + $0xe0] sm:$0xf]  ;;  %v827_v1 = vld [vmem:[#allocation5 + $0xec] sm:$0xf0] }
  0x10   :  { %v825_v2 = vld [vmem:[#allocation5 + $0xe4] sm:$0xf]  ;;  %v715_v3 = vor.u32 %v827_v1, %v714_v0  ;;  %v716_v4 = vld [vmem:[#allocation5 + $0xf0] sm:$0xf0]  ;;  %v698_v5 = vld [vmem:[#allocation5 + $0xc0] sm:$0xf] }
  0x11   :  { %v823_v6 = vld [vmem:[#allocation5 + $0xcc] sm:$0xf0]  ;;  %v719_v7 = vor.u32 %v825_v2, %v716_v4  ;;  %v821_v8 = vld [vmem:[#allocation5 + $0xc4] sm:$0xf]  ;;  %v700_v9 = vld [vmem:[#allocation5 + $0xd0] sm:$0xf0] }
  0x12   :  { %262 = vmatpush.bf16.msra.mxu0 %v715_v3  ;;  %v699_v10 = vor.u32 %v823_v6, %v698_v5  ;;  %v703_v11 = vor.u32 %v821_v8, %v700_v9  ;;  %v682_v12 = vld [vmem:[#allocation5 + $0xa0] sm:$0xf]  ;;  %v819_v13 = vld [vmem:[#allocation5 + $0xac] sm:$0xf0]  ;;  %v817_v14 = vld [vmem:[#allocation5 + $0xa4] sm:$0xf] }
  0x13   :  { %276 = vmatpush.bf16.msra.mxu1 %v719_v7  ;;  %v684_v15 = vld [vmem:[#allocation5 + $0xb0] sm:$0xf0]  ;;  %v722_v16 = vld [vmem:[#allocation5 + $0xe8] sm:$0xf]  ;;  %v683_v17 = vor.u32 %v819_v13, %v682_v12  ;;  %v828_v18 = vld [vmem:[#allocation5 + $0xf4] sm:$0xf0] }
  0x14   :  { %v826_v19 = vld [vmem:[#allocation5 + $0xec] sm:$0xf]  ;;  %v724_v20 = vld [vmem:[#allocation5 + $0xf8] sm:$0xf0]  ;;  %v687_v21 = vor.u32 %v817_v14, %v684_v15  ;;  %v666_v22 = vld [vmem:[#allocation5 + $0x80] sm:$0xf]  ;;  %v723_v25 = vor.u32 %v828_v18, %v722_v16 }
  0x15   :  { %v815_v23 = vld [vmem:[#allocation5 + $0x8c] sm:$0xf0]  ;;  %v813_v24 = vld [vmem:[#allocation5 + $0x84] sm:$0xf]  ;;  %v727_v26 = vor.u32 %v826_v19, %v724_v20  ;;  %v668_v27 = vld [vmem:[#allocation5 + $0x90] sm:$0xf0] }
  0x16   :  { %263 = vmatpush.bf16.msra.mxu0 %v699_v10  ;;  %v706_v28 = vld [vmem:[#allocation5 + $0xc8] sm:$0xf]  ;;  %v824_v29 = vld [vmem:[#allocation5 + $0xd4] sm:$0xf0]  ;;  %290 = vmatpush.bf16.msra.mxu2 %v723_v25  ;;  %v822_v31 = vld [vmem:[#allocation5 + $0xcc] sm:$0xf]  ;;  %v667_v33 = vor.u32 %v815_v23, %v666_v22  ;;  %v671_v37 = vor.u32 %v813_v24, %v668_v27 }
  0x17   :  { %277 = vmatpush.bf16.msra.mxu1 %v703_v11  ;;  %304 = vmatpush.bf16.msra.mxu3 %v727_v26  ;;  %v707_v30 = vor.u32 %v824_v29, %v706_v28  ;;  %v708_v32 = vld [vmem:[#allocation5 + $0xd8] sm:$0xf0]  ;;  %v650_v34 = vld [vmem:[#allocation5 + $0x60] sm:$0xf]  ;;  %v811_v35 = vld [vmem:[#allocation5 + $0x6c] sm:$0xf0] }
  0x18   :  { %v711_v36 = vor.u32 %v822_v31, %v708_v32  ;;  %v690_v38 = vld [vmem:[#allocation5 + $0xa8] sm:$0xf]  ;;  %v820_v39 = vld [vmem:[#allocation5 + $0xb4] sm:$0xf0]  ;;  %v818_v40 = vld [vmem:[#allocation5 + $0xac] sm:$0xf]  ;;  %v651_v47 = vor.u32 %v811_v35, %v650_v34 }
  0x19   :  { %v809_v41 = vld [vmem:[#allocation5 + $0x64] sm:$0xf]  ;;  %v652_v42 = vld [vmem:[#allocation5 + $0x70] sm:$0xf0]  ;;  %v692_v43 = vld [vmem:[#allocation5 + $0xb8] sm:$0xf0]  ;;  %v691_v44 = vor.u32 %v820_v39, %v690_v38 }
  0x1a   :  { %264 = vmatpush.bf16.msra.mxu0 %v683_v17  ;;  %291 = vmatpush.bf16.msra.mxu2 %v707_v30  ;;  %v695_v45 = vor.u32 %v818_v40, %v692_v43  ;;  %v674_v46 = vld [vmem:[#allocation5 + $0x88] sm:$0xf]  ;;  %v816_v48 = vld [vmem:[#allocation5 + $0x94] sm:$0xf0]  ;;  %v814_v49 = vld [vmem:[#allocation5 + $0x8c] sm:$0xf]  ;;  %v655_v51 = vor.u32 %v809_v41, %v652_v42 }
  0x1b   :  { %278 = vmatpush.bf16.msra.mxu1 %v687_v21  ;;  %305 = vmatpush.bf16.msra.mxu3 %v711_v36  ;;  %v676_v50 = vld [vmem:[#allocation5 + $0x98] sm:$0xf0]  ;;  %v634_v52 = vld [vmem:[#allocation5 + $0x40] sm:$0xf]  ;;  %v807_v53 = vld [vmem:[#allocation5 + $0x4c] sm:$0xf0]  ;;  %v675_v56 = vor.u32 %v816_v48, %v674_v46 }
  0x1c   :  { %v805_v54 = vld [vmem:[#allocation5 + $0x44] sm:$0xf]  ;;  %v636_v55 = vld [vmem:[#allocation5 + $0x50] sm:$0xf0]  ;;  %v679_v57 = vor.u32 %v814_v49, %v676_v50  ;;  %v658_v58 = vld [vmem:[#allocation5 + $0x68] sm:$0xf]  ;;  %v635_v59 = vor.u32 %v807_v53, %v634_v52 }
  0x1d   :  { %v812_v60 = vld [vmem:[#allocation5 + $0x74] sm:$0xf0]  ;;  %v810_v61 = vld [vmem:[#allocation5 + $0x6c] sm:$0xf]  ;;  %v660_v62 = vld [vmem:[#allocation5 + $0x78] sm:$0xf0]  ;;  %v639_v63 = vor.u32 %v805_v54, %v636_v55 }
  0x1e   :  { %265 = vmatpush.bf16.msra.mxu0 %v667_v33  ;;  %292 = vmatpush.bf16.msra.mxu2 %v691_v44  ;;  %v618_v0 = vld [vmem:[#allocation5 + $0x20] sm:$0xf]  ;;  %v803_v1 = vld [vmem:[#allocation5 + $0x2c] sm:$0xf0]  ;;  %v801_v2 = vld [vmem:[#allocation5 + $0x24] sm:$0xf]  ;;  %v659_v4 = vor.u32 %v812_v60, %v658_v58  ;;  %v663_v5 = vor.u32 %v810_v61, %v660_v62 }
  0x1f   :  { %279 = vmatpush.bf16.msra.mxu1 %v671_v37  ;;  %306 = vmatpush.bf16.msra.mxu3 %v695_v45  ;;  %v620_v3 = vld [vmem:[#allocation5 + $0x30] sm:$0xf0]  ;;  %v642_v6 = vld [vmem:[#allocation5 + $0x48] sm:$0xf]  ;;  %v619_v7 = vor.u32 %v803_v1, %v618_v0  ;;  %v808_v8 = vld [vmem:[#allocation5 + $0x54] sm:$0xf0] }
  0x20   :  { %v806_v9 = vld [vmem:[#allocation5 + $0x4c] sm:$0xf]  ;;  %v644_v10 = vld [vmem:[#allocation5 + $0x58] sm:$0xf0]  ;;  %v623_v11 = vor.u32 %v801_v2, %v620_v3  ;;  %v602_v12 = vld [vmem:[#allocation5] sm:$0xf]  ;;  %v643_v16 = vor.u32 %v808_v8, %v642_v6 }
  0x21   :  { %v799_v13 = vld [vmem:[#allocation5 + $0xc] sm:$0xf0]  ;;  %v797_v14 = vld [vmem:[#allocation5 + $0x4] sm:$0xf]  ;;  %v604_v15 = vld [vmem:[#allocation5 + $0x10] sm:$0xf0]  ;;  %v647_v17 = vor.u32 %v806_v9, %v644_v10 }
  0x22   :  { %266 = vmatpush.bf16.msra.mxu0 %v651_v47  ;;  %293 = vmatpush.bf16.msra.mxu2 %v675_v56  ;;  %v603_v18 = vor.u32 %v799_v13, %v602_v12  ;;  %v626_v19 = vld [vmem:[#allocation5 + $0x28] sm:$0xf]  ;;  %v804_v20 = vld [vmem:[#allocation5 + $0x34] sm:$0xf0]  ;;  %v607_v21 = vor.u32 %v797_v14, %v604_v15  ;;  %v802_v22 = vld [vmem:[#allocation5 + $0x2c] sm:$0xf] }
  0x23   :  { %280 = vmatpush.bf16.msra.mxu1 %v655_v51  ;;  %307 = vmatpush.bf16.msra.mxu3 %v679_v57  ;;  %v628_v23 = vld [vmem:[#allocation5 + $0x38] sm:$0xf0]  ;;  %v627_v25 = vor.u32 %v804_v20, %v626_v19  ;;  %v610_v27 = vld [vmem:[#allocation5 + $0x8] sm:$0xf]  ;;  %v800_v28 = vld [vmem:[#allocation5 + $0x14] sm:$0xf0] }
  0x24   :  { %v796_v24 = vld [vmem:[#allocation2] sm:$0xff]  ;;  %v631_v26 = vor.u32 %v802_v22, %v628_v23  ;;  %v798_v29 = vld [vmem:[#allocation5 + $0xc] sm:$0xf]  ;;  %v611_v31 = vor.u32 %v800_v28, %v610_v27  ;;  %v835_v35 = vld [vmem:[#allocation7 + $0x30] sm:$0xff]  ;;  %s980_s0 = smov [#allocation8]   ;;  %s582_s5 = sshll.u32 %s1046_s3, 4  ;;  %s583_s5 = int_to_ptr.hbm [resolvable:$true] %s582_s5 }
  0x25   :  { %v612_v30 = vld [vmem:[#allocation5 + $0x18] sm:$0xf0]  ;;  %v843_v36 = vld [vmem:[#allocation7 + $0x70] sm:$0xff]  ;;  %v834_v37 = vld [vmem:[#allocation7 + $0x28] sm:$0xff]  ;;  %s580_s2 = sshll.u32 %s980_s0, 4  ;;  %s981_s6 = smov 128   ;;  %s581_s2 = int_to_ptr.vmem [resolvable:$true] %s580_s2 }
  0x26   :  { %267 = vmatpush.bf16.msra.mxu0 %v635_v59  ;;  %294 = vmatpush.bf16.msra.mxu2 %v659_v4  ;;  %v615_v32 = vor.u32 %v798_v29, %v612_v30  ;;  %v836_v33 = vld [vmem:[#allocation7 + $0x38] sm:$0xff]  ;;  %v842_v38 = vld [vmem:[#allocation7 + $0x68] sm:$0xff]  ;;  %v833_v39 = vld [vmem:[#allocation7 + $0x20] sm:$0xff]  ;;  %s982_s7 = smov 8  }
  0x27   :  { %281 = vmatpush.bf16.msra.mxu1 %v639_v63  ;;  %308 = vmatpush.bf16.msra.mxu3 %v663_v5  ;;  %v844_v34 = vld [vmem:[#allocation7 + $0x78] sm:$0xff]  ;;  %v841_v40 = vld [vmem:[#allocation7 + $0x60] sm:$0xff]  ;;  %v831_v47 = vld [vmem:[#allocation7 + $0x10] sm:$0xff] }
  0x28   :  { %v832_v41 = vld [vmem:[#allocation7 + $0x18] sm:$0xff]  ;;  %v839_v48 = vld [vmem:[#allocation7 + $0x50] sm:$0xff]  ;;  %v830_v49 = vld [vmem:[#allocation7 + $0x8] sm:$0xff] }
  0x29   :  { %v840_v42 = vld [vmem:[#allocation7 + $0x58] sm:$0xff]  ;;  %v838_v50 = vld [vmem:[#allocation7 + $0x48] sm:$0xff]  ;;  %v829_v58 = vld [vmem:[#allocation7] sm:$0xff] }
  0x2a   :  { %268 = vmatpush.bf16.msra.mxu0 %v619_v7  ;;  %295 = vmatpush.bf16.msra.mxu2 %v643_v16  ;;  %v837_v59 = vld [vmem:[#allocation7 + $0x40] sm:$0xff] }
  0x2b   :  { %282 = vmatpush.bf16.msra.mxu1 %v623_v11  ;;  %309 = vmatpush.bf16.msra.mxu3 %v647_v17 }
  0x2e   :  { %269 = vmatpush.bf16.msra.mxu0 %v603_v18  ;;  %296 = vmatpush.bf16.msra.mxu2 %v627_v25 }
  0x2f   :  { %283 = vmatpush.bf16.msra.mxu1 %v607_v21  ;;  %310 = vmatpush.bf16.msra.mxu3 %v631_v26 }
  0x31   :  { %270 = vmatmul.bf16.vlgmr.msra.gmra.mxu0 %v796_v24 }
  0x32   :  { %284 = vmatmul.bf16.vlgmr.msra.gmra.mxu1 %v796_v24  ;;  %297 = vmatpush.bf16.msra.mxu2 %v611_v31 }
  0x33   :  { %311 = vmatpush.bf16.msra.mxu3 %v615_v32  ;;  %532 = vmatpush.bf16.msrb.mxu0 %v836_v33 }
  0x34   :  { %546 = vmatpush.bf16.msrb.mxu1 %v844_v34 }
  0x35   :  { %298 = vmatmul.bf16.vlgmr.msra.gmra.mxu2 %v796_v24 }
  0x36   :  { %312 = vmatmul.bf16.vlgmr.msra.gmra.mxu3 %v796_v24 }
  0x37   :  { %533 = vmatpush.bf16.msrb.mxu0 %v835_v35 }
  0x38   :  { %547 = vmatpush.bf16.msrb.mxu1 %v843_v36 }
  0x3b   :  { %534 = vmatpush.bf16.msrb.mxu0 %v834_v37 }
  0x3c   :  { %548 = vmatpush.bf16.msrb.mxu1 %v842_v38 }
  0x3f   :  { %535 = vmatpush.bf16.msrb.mxu0 %v833_v39 }
  0x40   :  { %549 = vmatpush.bf16.msrb.mxu1 %v841_v40 }
  0x43   :  { %536 = vmatpush.bf16.msrb.mxu0 %v832_v41 }
  0x44   :  { %550 = vmatpush.bf16.msrb.mxu1 %v840_v42 }
  0x47   :  { %537 = vmatpush.bf16.msrb.mxu0 %v831_v47 }
  0x48   :  { %551 = vmatpush.bf16.msrb.mxu1 %v839_v48 }
  0x4b   :  { %538 = vmatpush.bf16.msrb.mxu0 %v830_v49 }
  0x4c   :  { %552 = vmatpush.bf16.msrb.mxu1 %v838_v50 }
  0x4f   :  { %539 = vmatpush.bf16.msrb.mxu0 %v829_v58 }
  0x50   :  { %553 = vmatpush.bf16.msrb.mxu1 %v837_v59 }
  0xae   :  { %v1012_v43 = vpop.f32.mrf.mxu0 }
  0xaf   :  { %v728_v44 = vmul.f32 -1.442695, %v1012_v43  ;;  %v1015_v45 = vpop.f32.mrf.mxu1 }
  0xb0   :  { %v729_v46 = vmul.f32 -1.442695, %v1015_v45 }
  0xb1   :  { %855 = vpow2.f32 %v728_v44 }
  0xb2   :  { %857 = vpow2.f32 %v729_v46 }
  0xb6   :  { %v1018_v51 = vpop.f32.mrf.mxu0 }
  0xb7   :  { %v856_v52 = vpop.eup %855  ;;  %v730_v53 = vmul.f32 -1.442695, %v1018_v51  ;;  %v1021_v54 = vpop.f32.mrf.mxu1 }
  0xb8   :  { %v858_v55 = vpop.eup %857  ;;  %v330_v56 = vadd.f32 1.0, %v856_v52  ;;  %v731_v57 = vmul.f32 -1.442695, %v1021_v54  ;;  %v299_v17 = vpop.f32.mrf.mxu2 }
  0xb9   :  { %v331_v60 = vadd.f32 1.0, %v858_v55  ;;  %859 = vpow2.f32 %v730_v53  ;;  %v313_v28 = vpop.f32.mrf.mxu3 }
  0xba   :  { %861 = vrcp.f32 %v330_v56  ;;  %v345_v11 = vand.u32 2147483648, %v330_v56  ;;  %vm339_vm1 = vweird.f32 %v330_v56  ;;  %v343_v12 = vand.u32 2147483647, %v330_v56 }
  0xbb   :  { %863 = vrcp.f32 %v331_v60  ;;  %v358_v16 = vand.u32 2147483647, %v331_v60  ;;  %v360_v20 = vand.u32 2147483648, %v331_v60  ;;  %vm354_vm4 = vweird.f32 %v331_v60 }
  0xbc   :  { %865 = vpow2.f32 %v731_v57  ;;  %v346_v22 = vor.u32 1.1754944e-38, %v345_v11  ;;  %vm344_vm5 = vcmp.eq.f32.partialorder %v343_v12, 8.507059e+37 }
  0xbd   :  { %vm359_vm8 = vcmp.eq.f32.partialorder %v358_v16, 8.507059e+37  ;;  %v361_v32 = vor.u32 1.1754944e-38, %v360_v20 }
  0xbf   :  { %v860_v61 = vpop.eup %859 }
  0xc0   :  { %v862_v62 = vpop.eup %861  ;;  %v332_v63 = vadd.f32 1.0, %v860_v61  ;;  %v301_v49 = vpop.f32.mrf.mxu2 }
  0xc1   :  { %v864_v0 = vpop.eup %863  ;;  %v335_v1 = vmul.f32 %v862_v62, %v330_v56  ;;  %vm340_vm0 = vweird.f32 %v862_v62  ;;  %v315_v56 = vpop.f32.mrf.mxu3 }
  0xc2   :  { %v866_v2 = vpop.eup %865  ;;  %v350_v3 = vmul.f32 %v864_v0, %v331_v60  ;;  %867 = vrcp.f32 %v332_v63  ;;  %vm1024_vm2 = vmor %vm339_vm1, %vm340_vm0  ;;  %vm355_vm3 = vweird.f32 %v864_v0  ;;  %v375_v23 = vand.u32 2147483648, %v332_v63 }
  0xc3   :  { %v336_v4 = vsub.f32 1.0, %v335_v1  ;;  %v333_v5 = vadd.f32 1.0, %v866_v2  ;;  %vm1030_vm6 = vmor %vm354_vm4, %vm355_vm3  ;;  %v373_v27 = vand.u32 2147483647, %v332_v63  ;;  %vm369_vm9 = vweird.f32 %v332_v63 }
  0xc4   :  { %v351_v6 = vsub.f32 1.0, %v350_v3  ;;  %v376_v35 = vor.u32 1.1754944e-38, %v375_v23 }
  0xc5   :  { %v337_v7 = vmul.f32 %v862_v62, %v336_v4  ;;  %869 = vrcp.f32 %v333_v5  ;;  %v390_v34 = vand.u32 2147483648, %v333_v5  ;;  %v388_v37 = vand.u32 2147483647, %v333_v5 }
  0xc6   :  { %v352_v8 = vmul.f32 %v864_v0, %v351_v6  ;;  %vm374_vm12 = vcmp.eq.f32.partialorder %v373_v27, 8.507059e+37  ;;  %vm384_vm13 = vweird.f32 %v333_v5 }
  0xc7   :  { %v338_v9 = vadd.f32 %v862_v62, %v337_v7  ;;  %v391_v46 = vor.u32 1.1754944e-38, %v390_v34  ;;  %vm389_vm15 = vcmp.eq.f32.partialorder %v388_v37, 8.507059e+37 }
  0xc8   :  { %v868_v10 = vpop.eup %867  ;;  %v353_v15 = vadd.f32 %v864_v0, %v352_v8 }
  0xc9   :  { %v365_v13 = vmul.f32 %v868_v10, %v332_v63  ;;  %v342_v19 = vsel %vm1024_vm2, %v862_v62, %v338_v9  ;;  %vm370_vm7 = vweird.f32 %v868_v10 }
  0xca   :  { %v347_v29 = vsel %vm344_vm5, %v346_v22, %v342_v19  ;;  %v357_v30 = vsel %vm1030_vm6, %v864_v0, %v353_v15  ;;  %vm371_vm10 = vmor %vm369_vm9, %vm370_vm7 }
  0xcb   :  { %v870_v18 = vpop.eup %869  ;;  %v366_v21 = vsub.f32 1.0, %v365_v13  ;;  %v394_v38 = vmul.f32 %v347_v29, %v1012_v43  ;;  %v362_v39 = vsel %vm359_vm8, %v361_v32, %v357_v30 }
  0xcc   :  { %v380_v24 = vmul.f32 %v870_v18, %v333_v5  ;;  %vm385_vm11 = vweird.f32 %v870_v18  ;;  %v395_v47 = vmul.f32 %v362_v39, %v1015_v45 }
  0xcd   :  { %v367_v26 = vmul.f32 %v868_v10, %v366_v21  ;;  %vm386_vm14 = vmor %vm384_vm13, %vm385_vm11  ;;  %v398_v52 = vmul.f32 %v394_v38, %v299_v17 }
  0xce   :  { %v381_v31 = vsub.f32 1.0, %v380_v24  ;;  %v399_v57 = vmul.f32 %v395_v47, %v313_v28 }
  0xcf   :  { %v368_v33 = vadd.f32 %v868_v10, %v367_v26 }
  0xd0   :  { %v382_v36 = vmul.f32 %v870_v18, %v381_v31 }
  0xd1   :  { %v372_v40 = vsel %vm371_vm10, %v868_v10, %v368_v33 }
  0xd2   :  { %v377_v41 = vsel %vm374_vm12, %v376_v35, %v372_v40  ;;  %v383_v42 = vadd.f32 %v870_v18, %v382_v36 }
  0xd3   :  { %v396_v44 = vmul.f32 %v377_v41, %v1018_v51 }
  0xd4   :  { %v387_v48 = vsel %vm386_vm14, %v870_v18, %v383_v42 }
  0xd5   :  { %v392_v50 = vsel %vm389_vm15, %v391_v46, %v387_v48  ;;  %v400_v53 = vmul.f32 %v396_v44, %v301_v49 }
  0xd6   :  { %v397_v43 = vmul.f32 %v392_v50, %v1021_v54 }
  0xd7   :  { %v402_v55 = vpack.c.bf16 %v400_v53, %v398_v52 }
  0xd8   :  { %v401_v58 = vmul.f32 %v397_v43, %v315_v56 }
  0xd9   :  { %540 = vmatmul.bf16.vlgmr.msrb.gmra.mxu0 %v402_v55 }
  0xda   :  { %v403_v59 = vpack.c.bf16 %v401_v58, %v399_v57 }
  0xdc   :  { %554 = vmatmul.bf16.vlgmr.msrb.gmra.mxu1 %v403_v59 }
 0x156   :  { %v541_v51 = vpop.f32.mrf.mxu0 }
 0x159   :  { %v555_v60 = vpop.f32.mrf.mxu1 }
 0x15a   :  { %v556_v61 = vadd.f32 %v555_v60, %v541_v51 }
 0x15c   :  { %564 = vst [vmem:[#allocation8] sm:$0xff] %v556_v61 }
 0x15e   :  { %v543_v45 = vpop.f32.mrf.mxu0 }
 0x161   :  { %v557_v62 = vpop.f32.mrf.mxu1 }
 0x162   :  { %v558_v54 = vadd.f32 %v557_v62, %v543_v45 }
 0x164   :  { %565 = vst [vmem:[#allocation8 + $0x8] sm:$0xff] %v558_v54 }
 0x165   :  { %588 = dma.vmem_to_hbm [thread:$0]  %s581_s2, 256, %s583_s5, [#allocation4], %s981_s6, %s981_s6, %s982_s7  }
 0x166   :  { %971 = dma.done.wait [#allocation4], 256  }
 0x167   :  { %972 = vsyncadd [#allocation4], 4294967040 }
 0x168   :  { %593 = vsyncpa [#allocation3], 1 }
 0x169   :  { %594 = vsyncpa [#allocation6], 1 }
 0x16a   :  { %595 = vsyncpa [#allocation4], 1 }

</bundles_post_ra>
